<compile_context>
chip_gen: v7x
topology: tpu7x:2x2x1
jax: 0.10.0
libtpu: 0.0.40
codegen_flags: <defaults>
</compile_context>

<pallas_src>
import math
import functools

import jax
import jax.numpy as jnp
from jax.experimental import pallas as pl
from jax.experimental.pallas import tpu as pltpu


def _round_up(x, m):
    return ((x + m - 1) // m) * m


def _linear_wn_kernel(x_ref, w_ref, scale_ref, b_ref, o_ref, acc_ref, *, activations):
    # Grid = (M tiles, N tiles, K tiles); K is the reduction axis (last).
    k = pl.program_id(2)

    @pl.when(k == 0)
    def _():
        acc_ref[...] = jnp.zeros_like(acc_ref)

    # Pure MXU accumulate in the inner K loop (f32 accumulation).
    acc_ref[...] += jnp.dot(x_ref[...], w_ref[...],
                            preferred_element_type=jnp.float32)

    @pl.when(k == pl.num_programs(2) - 1)
    def _():
        # Fused weight-norm scale + bias, applied once per output tile, in f32.
        y = acc_ref[...] * scale_ref[...] + b_ref[...]
        if activations:
            # GeLU (tanh approximation), exactly as in the PyTorch GeLU module.
            y = 0.5 * y * (1.0 + jnp.tanh(y * 0.7978845608 * (1.0 + 0.044715 * y * y)))
        o_ref[...] = y.astype(o_ref.dtype)


def linear_weightnorm_forward(x, v, g, b, *, activations=False,
                              compute_dtype=jnp.float32,
                              tm=256, tn=256, tk=512):
    """Pallas forward for weight-normed Linear (+ optional GeLU).

    x: [B, Din] float32
    v: [Dout, Din] (PyTorch layout) — the weight_norm 'v' parameter
    g: [Dout]     — the weight_norm 'g' parameter (per-output-row gain)
    b: [Dout]     — bias
    compute_dtype: matmul operand dtype (jnp.float32 or jnp.bfloat16; accumulation is f32)
    """
    B, Din = x.shape
    Dout, Din_v = v.shape
    assert Din_v == Din, "v must be [Dout, Din]"

    # Fused weight-norm: y = (x @ v^T) * (g / ||v||_row) + b.
    v32 = v.astype(jnp.float32)
    row_norm = jnp.sqrt(jnp.sum(v32 * v32, axis=1))            # [Dout]
    scale = g.astype(jnp.float32) / row_norm                    # [Dout]

    # Tile sizes: keep (8, 128) layout legality, cap by padded problem size.
    tm = min(tm, _round_up(B, 8))
    tk = min(tk, _round_up(Din, 128))
    tn = min(tn, _round_up(Dout, 128))

    Mp = _round_up(B, tm)
    Kp = _round_up(Din, tk)
    Np = _round_up(Dout, tn)

    # Lane-dense padded operands (padding is zeros -> contributes nothing / sliced away).
    xp = jnp.zeros((Mp, Kp), compute_dtype).at[:B, :Din].set(x.astype(compute_dtype))
    wp = jnp.zeros((Kp, Np), compute_dtype).at[:Din, :Dout].set(v.T.astype(compute_dtype))
    sp = jnp.zeros((1, Np), jnp.float32).at[0, :Dout].set(scale)
    bp = jnp.zeros((1, Np), jnp.float32).at[0, :Dout].set(b.astype(jnp.float32))

    grid = (Mp // tm, Np // tn, Kp // tk)

    out = pl.pallas_call(
        functools.partial(_linear_wn_kernel, activations=activations),
        out_shape=jax.ShapeDtypeStruct((Mp, Np), jnp.float32),
        grid_spec=pltpu.PrefetchScalarGridSpec(
            num_scalar_prefetch=0,
            grid=grid,
            in_specs=[
                pl.BlockSpec((tm, tk), lambda i, j, k: (i, k)),   # x tile
                pl.BlockSpec((tk, tn), lambda i, j, k: (k, j)),   # v^T tile
                pl.BlockSpec((1, tn), lambda i, j, k: (0, j)),    # weight-norm scale
                pl.BlockSpec((1, tn), lambda i, j, k: (0, j)),    # bias
            ],
            out_specs=pl.BlockSpec((tm, tn), lambda i, j, k: (i, j)),
            scratch_shapes=[pltpu.VMEM((tm, tn), jnp.float32)],
        ),
        compiler_params=pltpu.CompilerParams(
            dimension_semantics=("parallel", "parallel", "arbitrary"),
        ),
    )(xp, wp, sp, bp)

    return out[:B, :Dout]


def init_linear_params(key, in_features, out_features, activations=False):
    """Deterministic init matching the PyTorch module's __init__."""
    std = math.sqrt((2.0 if activations else 1.0) / in_features)
    v = std * jax.random.normal(key, (out_features, in_features), dtype=jnp.float32)
    # weight_norm init: g = ||v||_row so that W_eff == v initially.
    g = jnp.sqrt(jnp.sum(v * v, axis=1))
    b = jnp.zeros((out_features,), dtype=jnp.float32)
    return v, g, b


if __name__ == "__main__":
    key = jax.random.PRNGKey(0)
    kx, kw = jax.random.split(key)

    # Small shapes consistent with the module (50-dim features -> 20 classes, shrunk):
    # batch=8, in_features=32, out_features=20, with the GeLU path exercised.
    B, Din, Dout = 8, 32, 20
    activations = True

    x = jax.random.normal(kx, (B, Din), dtype=jnp.float32)
    v, g, b = init_linear_params(kw, Din, Dout, activations=activations)

    # Pure-JAX reference (same math as the PyTorch module).
    row_norm = jnp.sqrt(jnp.sum(v * v, axis=1, keepdims=True))
    w_eff = (g[:, None] / row_norm) * v
    ref = x @ w_eff.T + b
    if activations:
        ref = 0.5 * ref * (1.0 + jnp.tanh(ref * 0.7978845608 * (1.0 + 0.044715 * ref * ref)))

    # f32-operand path (tight tolerance).
    out_f32 = jax.block_until_ready(
        linear_weightnorm_forward(x, v, g, b, activations=activations,
                                  compute_dtype=jnp.float32))
    assert jnp.allclose(out_f32, ref, atol=1e-5, rtol=1e-5), "f32 kernel mismatch vs reference"

    # bf16-operand / f32-accumulate path (relaxed tolerance, halves DMA + faster MXU).
    out_bf16 = jax.block_until_ready(
        linear_weightnorm_forward(x, v, g, b, activations=activations,
                                  compute_dtype=jnp.bfloat16))
    assert jnp.allclose(out_bf16, ref, atol=5e-2, rtol=5e-2), "bf16 kernel mismatch vs reference"

    print("KERNEL_OK")
</pallas_src>

<mosaic_0001>
module attributes {stable_mosaic.version = 11 : i64} {
  func.func @_linear_wn_kernel(%arg0: i32, %arg1: i32, %arg2: i32, %arg3: memref<8x128xf32, #tpu.memory_space<vmem>>, %arg4: memref<128x128xf32, #tpu.memory_space<vmem>>, %arg5: memref<1x128xf32, #tpu.memory_space<vmem>>, %arg6: memref<1x128xf32, #tpu.memory_space<vmem>>, %arg7: memref<8x128xf32, #tpu.memory_space<vmem>>, %arg8: memref<8x128xf32, #tpu.memory_space<vmem>>) attributes {dimension_semantics = [#tpu.dimension_semantics<parallel>, #tpu.dimension_semantics<parallel>, #tpu.dimension_semantics<arbitrary>], iteration_bounds = array<i64: 1, 1, 1>, scalar_prefetch = 0 : i64, scratch_operands = 1 : i64, tpu.core_type = #tpu.core_type<tc>, window_params = [{transform_indices = @transform_0, window_bounds = array<i64: 8, 128>}, {transform_indices = @transform_1, window_bounds = array<i64: 128, 128>}, {transform_indices = @transform_2, window_bounds = array<i64: 1, 128>}, {transform_indices = @transform_3, window_bounds = array<i64: 1, 128>}, {transform_indices = @transform_4, window_bounds = array<i64: 8, 128>}]} {
    %c0_i32 = arith.constant 0 : i32
    %0 = arith.cmpi eq, %arg2, %c0_i32 : i32
    %1 = arith.extui %0 : i1 to i32
    %c0_i32_0 = arith.constant 0 : i32
    %2 = arith.cmpi ne, %1, %c0_i32_0 : i32
    scf.if %2 {
      %cst_10 = arith.constant 0.000000e+00 : f32
      %12 = vector.broadcast %cst_10 : f32 to vector<8x128xf32>
      %c0_11 = arith.constant 0 : index
      %c0_12 = arith.constant 0 : index
      %13 = vector.load %arg8[%c0_11, %c0_12] : memref<8x128xf32, #tpu.memory_space<vmem>>, vector<8x128xf32>
      tpu.vector_store %arg8[%c0_11, %c0_12], %12 {strides = array<i32>} : memref<8x128xf32, #tpu.memory_space<vmem>>, vector<8x128xf32>,
    } else {
    }
    %c0 = arith.constant 0 : index
    %c0_1 = arith.constant 0 : index
    %3 = vector.load %arg8[%c0, %c0_1] : memref<8x128xf32, #tpu.memory_space<vmem>>, vector<8x128xf32>
    %c0_2 = arith.constant 0 : index
    %c0_3 = arith.constant 0 : index
    %4 = vector.load %arg3[%c0_2, %c0_3] : memref<8x128xf32, #tpu.memory_space<vmem>>, vector<8x128xf32>
    %c0_4 = arith.constant 0 : index
    %c0_5 = arith.constant 0 : index
    %5 = vector.load %arg4[%c0_4, %c0_5] : memref<128x128xf32, #tpu.memory_space<vmem>>, vector<128x128xf32>
    %cst = arith.constant dense<0.000000e+00> : vector<8x128xf32>
    %6 = tpu.matmul %4, %5, %cst {dimension_numbers = #tpu.dot_dimension_numbers<[1], [0], [0], [1], [0, 0, 1, 1], [], []>} : vector<8x128xf32>, vector<128x128xf32>, vector<8x128xf32> -> vector<8x128xf32>
    %7 = arith.addf %3, %6 : vector<8x128xf32>
    %c0_6 = arith.constant 0 : index
    %c0_7 = arith.constant 0 : index
    %8 = vector.load %arg8[%c0_6, %c0_7] : memref<8x128xf32, #tpu.memory_space<vmem>>, vector<8x128xf32>
    tpu.vector_store %arg8[%c0_6, %c0_7], %7 {strides = array<i32>} : memref<8x128xf32, #tpu.memory_space<vmem>>, vector<8x128xf32>,
    %c0_i32_8 = arith.constant 0 : i32
    %9 = arith.cmpi eq, %arg2, %c0_i32_8 : i32
    %10 = arith.extui %9 : i1 to i32
    %c0_i32_9 = arith.constant 0 : i32
    %11 = arith.cmpi ne, %10, %c0_i32_9 : i32
    scf.if %11 {
      %c0_10 = arith.constant 0 : index
      %c0_11 = arith.constant 0 : index
      %12 = vector.load %arg8[%c0_10, %c0_11] : memref<8x128xf32, #tpu.memory_space<vmem>>, vector<8x128xf32>
      %c0_12 = arith.constant 0 : index
      %c0_13 = arith.constant 0 : index
      %13 = vector.load %arg5[%c0_12, %c0_13] : memref<1x128xf32, #tpu.memory_space<vmem>>, vector<1x128xf32>
      %14 = vector.broadcast %13 : vector<1x128xf32> to vector<8x128xf32>
      %15 = arith.mulf %12, %14 : vector<8x128xf32>
      %c0_14 = arith.constant 0 : index
      %c0_15 = arith.constant 0 : index
      %16 = vector.load %arg6[%c0_14, %c0_15] : memref<1x128xf32, #tpu.memory_space<vmem>>, vector<1x128xf32>
      %17 = vector.broadcast %16 : vector<1x128xf32> to vector<8x128xf32>
      %18 = arith.addf %15, %17 : vector<8x128xf32>
      %cst_16 = arith.constant 5.000000e-01 : f32
      %19 = vector.broadcast %cst_16 : f32 to vector<8x128xf32>
      %20 = arith.mulf %19, %18 : vector<8x128xf32>
      %cst_17 = arith.constant 0.797884583 : f32
      %21 = vector.broadcast %cst_17 : f32 to vector<8x128xf32>
      %22 = arith.mulf %18, %21 : vector<8x128xf32>
      %cst_18 = arith.constant 4.471500e-02 : f32
      %23 = vector.broadcast %cst_18 : f32 to vector<8x128xf32>
      %24 = arith.mulf %23, %18 : vector<8x128xf32>
      %25 = arith.mulf %24, %18 : vector<8x128xf32>
      %cst_19 = arith.constant 1.000000e+00 : f32
      %26 = vector.broadcast %cst_19 : f32 to vector<8x128xf32>
      %27 = arith.addf %26, %25 : vector<8x128xf32>
      %28 = arith.mulf %22, %27 : vector<8x128xf32>
      %29 = math.tanh %28 : vector<8x128xf32>
      %cst_20 = arith.constant 1.000000e+00 : f32
      %30 = vector.broadcast %cst_20 : f32 to vector<8x128xf32>
      %31 = arith.addf %30, %29 : vector<8x128xf32>
      %32 = arith.mulf %20, %31 : vector<8x128xf32>
      %c0_21 = arith.constant 0 : index
      %c0_22 = arith.constant 0 : index
      %33 = vector.load %arg7[%c0_21, %c0_22] : memref<8x128xf32, #tpu.memory_space<vmem>>, vector<8x128xf32>
      tpu.vector_store %arg7[%c0_21, %c0_22], %32 {strides = array<i32>} : memref<8x128xf32, #tpu.memory_space<vmem>>, vector<8x128xf32>,
    } else {
    }
    return
  }
  func.func @transform_0(%arg0: i32, %arg1: i32, %arg2: i32) -> (i32, i32) {
    %c0_i32 = arith.constant 0 : i32
    return %arg0, %arg2 : i32, i32
  }
  func.func @transform_1(%arg0: i32, %arg1: i32, %arg2: i32) -> (i32, i32) {
    %c0_i32 = arith.constant 0 : i32
    return %arg2, %arg1 : i32, i32
  }
  func.func @transform_2(%arg0: i32, %arg1: i32, %arg2: i32) -> (i32, i32) {
    %c0_i32 = arith.constant 0 : i32
    %c0_i32_0 = arith.constant 0 : i32
    return %c0_i32, %arg1 : i32, i32
  }
  func.func @transform_3(%arg0: i32, %arg1: i32, %arg2: i32) -> (i32, i32) {
    %c0_i32 = arith.constant 0 : i32
    %c0_i32_0 = arith.constant 0 : i32
    return %c0_i32, %arg1 : i32, i32
  }
  func.func @transform_4(%arg0: i32, %arg1: i32, %arg2: i32) -> (i32, i32) {
    %c0_i32 = arith.constant 0 : i32
    return %arg0, %arg1 : i32, i32
  }
}

</mosaic_0001>

<bundles_post_ra>
// kernel: tpu_custom_call.1
= control target key start
LH: loop header
LB: loop body
LE: loop exit
PB: predicated region body
PF: predicated region fallthrough
CT: control target
= control target key end

     0   :  { %9 = vsyncpa [#allocation4], 0  ;;  %s427_s0 = inlined_call_operand.hbm [shape: f32[8,128], index: 0, kind: input, shape index: {}]   ;;  %s428_s1 = inlined_call_operand.hbm [shape: f32[128,128], index: 1, kind: input, shape index: {}]   ;;  %s429_s2 = inlined_call_operand.vmem [shape: f32[1,128], index: 2, kind: input, shape index: {}]   ;;  %s430_s3 = inlined_call_operand.vmem [shape: f32[1,128], index: 3, kind: input, shape index: {}]   ;;  %s431_s4 = inlined_call_operand.hbm [shape: f32[8,128], index: 4, kind: output, shape index: {}]  }
   0x1   :  { %10 = vsyncpa [#allocation7], 0 }
   0x2   :  { %11 = vsyncpa [#allocation5], 0  ;;  %s345_s15 = smov [#allocation3]   ;;  %s346_s17 = smov [#allocation6]  }
   0x3   :  { %s18_s16 = sshll.u32 %s345_s15, 4  ;;  %s27_s18 = sshll.u32 %s346_s17, 4  ;;  %s19_s16 = int_to_ptr.vmem [resolvable:$true] %s18_s16  ;;  %s378_s18 = int_to_ptr.vmem [resolvable:$true] %s27_s18 }
   0x4   :  { %s273_s21 = scalar_lea.hbm %s427_s0, 128 }
   0x5   :  { %p274_p0 = scmp.ne.s32.totalorder %s427_s0, %s273_s21  ;;  %p277_p1 = scmp.lt.u32.totalorder %s273_s21, %s427_s0 }
   0x7   :  { %p279_p2 = pnand %p277_p1, %p274_p0 }
   0x9   :  { %282 = shalt.err (!%p279_p2)
}
   0xa   :  { %s283_s26 = scalar_lea.vmem %s19_s16, 128  ;;  %p288_p4 = scmp.lt.s32.totalorder %s19_s16, %s19_s16 }
   0xb   :  { %p284_p3 = scmp.ne.s32.totalorder %s19_s16, %s283_s26  ;;  %p289_p5 = scmp.lt.s32.totalorder %s283_s26, %s283_s26 }
   0xd   :  { %p290_p6 = por %p289_p5, %p288_p4 }
   0xf   :  { %p291_p7 = pnand %p290_p6, %p284_p3 }
  0x11   :  { %294 = shalt.err (!%p291_p7)
}
  0x12   :  { %21 = dma.hbm_to_vmem [thread:$0]  %s427_s0, 128, %s19_s16, [#allocation4]  }
  0x13   :  { %s295_s5 = scalar_lea.hbm %s428_s1, 2048 }
  0x14   :  { %p296_p8 = scmp.ne.s32.totalorder %s428_s1, %s295_s5  ;;  %p299_p9 = scmp.lt.u32.totalorder %s295_s5, %s428_s1 }
  0x16   :  { %p301_p10 = pnand %p299_p9, %p296_p8 }
  0x18   :  { %304 = shalt.err (!%p301_p10)
}
  0x19   :  { %s305_s10 = scalar_lea.vmem %s378_s18, 2048  ;;  %p310_p12 = scmp.lt.s32.totalorder %s378_s18, %s378_s18 }
  0x1a   :  { %p306_p11 = scmp.ne.s32.totalorder %s378_s18, %s305_s10  ;;  %p311_p13 = scmp.lt.s32.totalorder %s305_s10, %s305_s10 }
  0x1c   :  { %p312_p0 = por %p311_p13, %p310_p12 }
  0x1e   :  { %p313_p1 = pnand %p312_p0, %p306_p11 }
  0x20   :  { %316 = shalt.err (!%p313_p1)
}
  0x21   :  { %s347_s0 = smov 128   ;;  %s348_s11 = smov 8  }
  0x22   :  { %33 = dma.hbm_to_vmem [thread:$0]  %s428_s1, 2048, %s378_s18, [#allocation7], %s347_s0, %s347_s0, %s348_s11  }
  0x23   :  { %339 = dma.done.wait [#allocation4], 128  }
  0x24   :  { %340 = vsyncadd [#allocation4], 4294967168 }
  0x25   :  { %341 = dma.done.wait [#allocation7], 2048  }
  0x26   :  { %342 = vsyncadd [#allocation7], 4294965248  ;;  %v349_v0 = vmov 0.0|0.0   ;;  %vm350_vm0 = vmmov 0   ;;  %v351_v1 = vmov 0.0   ;;  %v51_v2 = vld [vmem:[#allocation6] sm:$0xff] }
  0x27   :  { %239 = vmatprep.subr.bf16.mxu0 %v349_v0  ;;  %236 = vmatprep.mubr.msk.f32.mxu0 %vm350_vm0, %v351_v1  ;;  %v52_v3 = vld [vmem:[#allocation6 + $0x8] sm:$0xff]  ;;  %v53_v4 = vld [vmem:[#allocation6 + $0x10] sm:$0xff]  ;;  %v54_v6 = vld [vmem:[#allocation6 + $0x18] sm:$0xff]  ;;  %s352_s17 = smov [#allocation8]  }
  0x28   :  { %v240_v5 = vpack.c.bf16 %v52_v3, %v51_v2  ;;  %v243_v7 = vpack.c.bf16 %v54_v6, %v53_v4  ;;  %v55_v8 = vld [vmem:[#allocation6 + $0x20] sm:$0xff]  ;;  %v56_v9 = vld [vmem:[#allocation6 + $0x28] sm:$0xff]  ;;  %v57_v11 = vld [vmem:[#allocation6 + $0x30] sm:$0xff]  ;;  %s175_s18 = sshll.u32 %s352_s17, 4  ;;  %s176_s18 = int_to_ptr.vmem [resolvable:$true] %s175_s18 }
  0x29   :  { %v246_v10 = vpack.c.bf16 %v56_v9, %v55_v8  ;;  %v58_v12 = vld [vmem:[#allocation6 + $0x38] sm:$0xff]  ;;  %v59_v14 = vld [vmem:[#allocation6 + $0x40] sm:$0xff]  ;;  %v60_v15 = vld [vmem:[#allocation6 + $0x48] sm:$0xff]  ;;  %p322_p3 = scmp.lt.s32.totalorder %s176_s18, %s176_s18 }
  0x2a   :  { %241 = vmatpush3.bf16.msra.mxu0 %v240_v5  ;;  %v249_v13 = vpack.c.bf16 %v58_v12, %v57_v11  ;;  %v252_v16 = vpack.c.bf16 %v60_v15, %v59_v14  ;;  %v61_v17 = vld [vmem:[#allocation6 + $0x50] sm:$0xff]  ;;  %v62_v18 = vld [vmem:[#allocation6 + $0x58] sm:$0xff]  ;;  %v63_v20 = vld [vmem:[#allocation6 + $0x60] sm:$0xff] }
  0x2b   :  { %242 = vmatprep.subr.bf16.mxu0 %v349_v0  ;;  %v255_v19 = vpack.c.bf16 %v62_v18, %v61_v17  ;;  %v64_v21 = vld [vmem:[#allocation6 + $0x68] sm:$0xff]  ;;  %v65_v23 = vld [vmem:[#allocation6 + $0x70] sm:$0xff]  ;;  %v66_v24 = vld [vmem:[#allocation6 + $0x78] sm:$0xff] }
  0x2c   :  { %v258_v22 = vpack.c.bf16 %v64_v21, %v63_v20  ;;  %v261_v25 = vpack.c.bf16 %v66_v24, %v65_v23  ;;  %v50_v26 = vld [vmem:[#allocation3] sm:$0xff] }
  0x2d   :  { %v185_v27 = vld [vmem:[%s429_s2] ss:$0 sm:$0xff]  ;;  %s317_s2 = scalar_lea.vmem %s176_s18, 128 }
  0x2e   :  { %244 = vmatpush3.bf16.msra.mxu0 %v243_v7  ;;  %v186_v29 = vld [vmem:[%s430_s3] ss:$0 sm:$0xff]  ;;  %p318_p2 = scmp.ne.s32.totalorder %s176_s18, %s317_s2  ;;  %p323_p4 = scmp.lt.s32.totalorder %s317_s2, %s317_s2 }
  0x2f   :  { %245 = vmatprep.subr.bf16.mxu0 %v349_v0 }
  0x30   :  { %p324_p5 = por %p323_p4, %p322_p3 }
  0x32   :  { %247 = vmatpush3.bf16.msra.mxu0 %v246_v10  ;;  %p325_p6 = pnand %p324_p5, %p318_p2 }
  0x33   :  { %248 = vmatprep.subr.bf16.mxu0 %v349_v0 }
  0x36   :  { %250 = vmatpush3.bf16.msra.mxu0 %v249_v13 }
  0x37   :  { %251 = vmatprep.subr.bf16.mxu0 %v349_v0 }
  0x3a   :  { %253 = vmatpush3.bf16.msra.mxu0 %v252_v16 }
  0x3b   :  { %254 = vmatprep.subr.bf16.mxu0 %v349_v0 }
  0x3e   :  { %256 = vmatpush3.bf16.msra.mxu0 %v255_v19 }
  0x3f   :  { %257 = vmatprep.subr.bf16.mxu0 %v349_v0 }
  0x42   :  { %259 = vmatpush3.bf16.msra.mxu0 %v258_v22 }
  0x43   :  { %260 = vmatprep.subr.bf16.mxu0 %v349_v0 }
  0x46   :  { %262 = vmatpush3.bf16.msra.mxu0 %v261_v25 }
  0x49   :  { %237 = vmatmul.mubr.f32.vlgmr.msra.gmra.mrb[0].mxu0 %v50_v26 }
 0x11c   :  { %v133_v28 = vpop.f32.mrb[0].mxu0 }
 0x11d   :  { %v150_v30 = vmul.f32 %v185_v27, %v133_v28  ;;  %v238_v31 = vpop.f32.mrb[1].mxu0 }
 0x11f   :  { %v158_v32 = vadd.f32 %v186_v29, %v150_v30 }
 0x121   :  { %v161_v33 = vmul.f32 0.044715, %v158_v32  ;;  %v160_v35 = vmul.f32 0.7978846, %v158_v32  ;;  %v159_v39 = vmul.f32 0.5, %v158_v32 }
 0x123   :  { %v162_v34 = vmul.f32 %v161_v33, %v158_v32 }
 0x125   :  { %v163_v36 = vadd.f32 1.0, %v162_v34 }
 0x127   :  { %v164_v37 = vmul.f32 %v163_v36, %v160_v35 }
 0x129   :  { %271 = vtanh.f32 %v164_v37 }
 0x133   :  { %v272_v38 = vpop.eup %271 }
 0x134   :  { %v166_v40 = vadd.f32 1.0, %v272_v38 }
 0x136   :  { %v167_v41 = vmul.f32 %v166_v40, %v159_v39 }
 0x138   :  { %168 = vst [vmem:[#allocation8] sm:$0xff] %v167_v41 }
 0x139   :  { %328 = shalt.err (!%p325_p6)
}
 0x13a   :  { %s329_s20 = scalar_lea.hbm %s431_s4, 128 }
 0x13b   :  { %p330_p7 = scmp.ne.s32.totalorder %s431_s4, %s329_s20  ;;  %p333_p8 = scmp.lt.u32.totalorder %s329_s20, %s431_s4 }
 0x13d   :  { %p335_p9 = pnand %p333_p8, %p330_p7 }
 0x13f   :  { %338 = shalt.err (!%p335_p9)
}
 0x140   :  { %178 = dma.vmem_to_hbm [thread:$0]  %s176_s18, 128, %s431_s4, [#allocation5]  }
 0x141   :  { %343 = dma.done.wait [#allocation5], 128  }
 0x142   :  { %344 = vsyncadd [#allocation5], 4294967168 }
 0x143   :  { %182 = vsyncpa [#allocation4], 1 }
 0x144   :  { %183 = vsyncpa [#allocation7], 1 }
 0x145   :  { %184 = vsyncpa [#allocation5], 1 }

</bundles_post_ra>
